<compile_context>
chip_gen: v7x
topology: tpu7x:2x2x1
jax: 0.10.0
libtpu: 0.0.40
codegen_flags: <defaults>
</compile_context>

<pallas_src>
import jax
import jax.numpy as jnp
from jax.experimental import pallas as pl
from jax.experimental.pallas import tpu as pltpu


def _round_up(n, m):
    return ((n + m - 1) // m) * m


def _pick_tile(batch):
    """Largest 8-aligned row tile that divides the batch (falls back to B)."""
    for tb in (256, 128, 64, 32, 16, 8):
        if batch % tb == 0:
            return tb
    return batch


# ----------------------------------------------------------------------------
# Wrapper: pool + flatten + weight folding host-side, one fused pallas_call.
# ----------------------------------------------------------------------------
@jax.jit
def stagewise_forward(x_nchw, params):
    B, Cin, H, W = x_nchw.shape
    Cout = params["conv_w"].shape[0]
    K = params["fc1_w"].shape[0]            # bin_size (10)
    P = H // 2                              # pooled spatial side
    S = P * P                               # pooled pixels per image
    in_feat = Cin * S + 1                   # pooled-input features + ones column

    # ---- AvgPool2d(2) commuted with the 1x1 conv: pool the INPUT (exact).
    x = x_nchw.astype(jnp.float32)
    xp = x.reshape(B, Cin, P, 2, P, 2).mean(axis=(3, 5))       # (B, Cin, P, P)
    xflat = xp.reshape(B, Cin * S)                              # flat idx = i*S + s
    x_aug = jnp.concatenate([xflat, jnp.ones((B, 1), jnp.float32)], axis=1)

    # ---- Fold conv1x1 (+bias) and the NCHW Flatten permutation into fc1.
    conv_w = params["conv_w"].reshape(Cout, Cin).astype(jnp.float32)
    conv_b = params["conv_b"].astype(jnp.float32)
    fc1_r = params["fc1_w"].astype(jnp.float32).reshape(K, Cout, S)   # [k,c,s]
    A = jnp.einsum("kcs,ci->kis", fc1_r, conv_w).reshape(K, Cin * S)
    a0 = jnp.einsum("kcs,c->k", fc1_r, conv_b)
    A_aug = jnp.concatenate([A, a0[:, None]], axis=1).T               # (in_feat, K)

    # ---- Pack every remaining weight into one slab (2 kernel operands total).
    w2t = params["fc2_w"].astype(jnp.float32).T                       # (K, 2K)
    wdt = params["dist_w"].astype(jnp.float32).T                      # (2K, K)
    binw = params["bin_w"].astype(jnp.float32).reshape(1, K)          # (1, K)

    row_a = 0
    row_w2 = _round_up(in_feat, 8)
    row_wd = _round_up(row_w2 + K, 8)
    row_bin = _round_up(row_wd + 2 * K, 8)
    n_rows = row_bin + 1
    n_cols = 2 * K

    wslab = jnp.zeros((n_rows, n_cols), jnp.float32)
    wslab = wslab.at[row_a:row_a + in_feat, 0:K].set(A_aug)
    wslab = wslab.at[row_w2:row_w2 + K, 0:2 * K].set(w2t)
    wslab = wslab.at[row_wd:row_wd + 2 * K, 0:K].set(wdt)
    wslab = wslab.at[row_bin:row_bin + 1, 0:K].set(binw)

    TB = _pick_tile(B)

    def kernel(x_ref, w_ref, o_ref):
        f32 = jnp.float32
        # Static, 8-aligned slices of the single weight slab (views -> loads).
        a_mat = w_ref[row_a:row_a + in_feat, 0:K]        # conv+flatten+fc1 folded
        w2 = w_ref[row_w2:row_w2 + K, 0:2 * K]           # fc2
        wd = w_ref[row_wd:row_wd + 2 * K, 0:K]           # age_dist
        binr = w_ref[row_bin:row_bin + 1, 0:K]           # age_bin weights

        # Dropout(0.2) is identity at inference.
        # TODO(synk): train-mode dropout (RNG masking + 1/(1-p) scaling) not implemented.
        z1 = jnp.maximum(jnp.dot(x_ref[...], a_mat, preferred_element_type=f32), 0.0)
        z2 = jnp.maximum(jnp.dot(z1, w2, preferred_element_type=f32), 0.0)
        logits = jnp.dot(z2, wd, preferred_element_type=f32)

        # Softmax(dim=1)
        m = jnp.max(logits, axis=-1, keepdims=True)
        e = jnp.exp(logits - m)
        probs = e / jnp.sum(e, axis=-1, keepdims=True)

        # age_bin: weighted sum with bin_array.
        o_ref[...] = jnp.sum(probs * binr, axis=-1, keepdims=True)

    return pl.pallas_call(
        kernel,
        out_shape=jax.ShapeDtypeStruct((B, 1), jnp.float32),
        grid=(B // TB,),
        in_specs=[
            pl.BlockSpec((TB, in_feat), lambda i: (i, 0)),      # batch-tiled activation
            pl.BlockSpec((n_rows, n_cols), lambda i: (0, 0)),   # weights: resident
        ],
        out_specs=pl.BlockSpec((TB, 1), lambda i: (i, 0)),
        compiler_params=pltpu.CompilerParams(dimension_semantics=("parallel",)),
    )(x_aug, wslab)


# ----------------------------------------------------------------------------
# Pure-JAX layer-by-layer reference (mirrors the PyTorch module literally).
# ----------------------------------------------------------------------------
def ref_forward(x_nchw, params):
    x = x_nchw.astype(jnp.float32)
    y = jax.lax.conv_general_dilated(
        x, params["conv_w"].astype(jnp.float32), (1, 1), "VALID",
        dimension_numbers=("NCHW", "OIHW", "NCHW"))
    y = y + params["conv_b"].reshape(1, -1, 1, 1)
    y = jax.lax.reduce_window(y, 0.0, jax.lax.add,
                              (1, 1, 2, 2), (1, 1, 2, 2), "VALID") * 0.25
    f = y.reshape(y.shape[0], -1)                     # torch Flatten (NCHW order)
    # dropout: identity in eval mode
    z1 = jnp.maximum(f @ params["fc1_w"].T, 0.0)
    z2 = jnp.maximum(z1 @ params["fc2_w"].T, 0.0)
    probs = jax.nn.softmax(z2 @ params["dist_w"].T, axis=1)
    return probs @ params["bin_w"].reshape(-1, 1)


# ----------------------------------------------------------------------------
def make_params(key, in_channels=30, out_channels=10, bin_size=10):
    ks = jax.random.split(key, 5)
    return dict(
        conv_w=jax.random.normal(ks[0], (out_channels, in_channels, 1, 1), jnp.float32) * 0.1,
        conv_b=jax.random.normal(ks[1], (out_channels,), jnp.float32) * 0.1,
        fc1_w=jax.random.normal(ks[2], (bin_size, 4 * 4 * out_channels), jnp.float32) * 0.1,
        fc2_w=jax.random.normal(ks[3], (2 * bin_size, bin_size), jnp.float32) * 0.1,
        dist_w=jax.random.normal(ks[4], (bin_size, 2 * bin_size), jnp.float32) * 0.1,
        bin_w=jnp.arange(bin_size, dtype=jnp.float32) * 10.0,   # __init_age_bin__: [0,10,...,90]
    )


if __name__ == "__main__":
    key = jax.random.PRNGKey(0)
    kx, kp = jax.random.split(key)

    # fc1 expects 4*4*out_channels features after the 2x2 pool -> input spatial is 8x8.
    B, C, H, W = 2, 30, 8, 8
    x = jax.random.normal(kx, (B, C, H, W), jnp.float32)
    params = make_params(kp)

    age = jax.block_until_ready(stagewise_forward(x, params))
    assert age.shape == (B, 1), age.shape

    ref = jax.block_until_ready(ref_forward(x, params))
    # atol 1e-3: the host-side (exact) algebraic fold of conv into fc1 only
    # introduces f32 re-association error, well below this on ages ~0..90.
    assert jnp.allclose(age, ref, rtol=1e-4, atol=1e-3), (
        float(jnp.max(jnp.abs(age - ref))))

    print("KERNEL_OK")
</pallas_src>

<mosaic_0001>
module attributes {stable_mosaic.version = 11 : i64} {
  func.func @kernel(%arg0: i32, %arg1: memref<2x481xf32, #tpu.memory_space<vmem>>, %arg2: memref<529x20xf32, #tpu.memory_space<vmem>>, %arg3: memref<2x1xf32, #tpu.memory_space<vmem>>) attributes {dimension_semantics = [#tpu.dimension_semantics<parallel>], iteration_bounds = array<i64: 1>, scalar_prefetch = 0 : i64, scratch_operands = 0 : i64, tpu.core_type = #tpu.core_type<tc>, window_params = [{transform_indices = @transform_0, window_bounds = array<i64: 2, 481>}, {pipeline_mode = #tpu.pipeline_mode<synchronous>, transform_indices = @transform_1, window_bounds = array<i64: 529, 20>}, {transform_indices = @transform_2, window_bounds = array<i64: 2, 1>}]} {
    %c0 = arith.constant 0 : index
    %c0_0 = arith.constant 0 : index
    %0 = vector.load %arg2[%c0, %c0_0] : memref<529x20xf32, #tpu.memory_space<vmem>>, vector<481x10xf32>
    %c488 = arith.constant 488 : index
    %c0_1 = arith.constant 0 : index
    %1 = vector.load %arg2[%c488, %c0_1] : memref<529x20xf32, #tpu.memory_space<vmem>>, vector<10x20xf32>
    %c504 = arith.constant 504 : index
    %c0_2 = arith.constant 0 : index
    %2 = vector.load %arg2[%c504, %c0_2] : memref<529x20xf32, #tpu.memory_space<vmem>>, vector<20x10xf32>
    %c528 = arith.constant 528 : index
    %c0_3 = arith.constant 0 : index
    %3 = vector.load %arg2[%c528, %c0_3] : memref<529x20xf32, #tpu.memory_space<vmem>>, vector<1x10xf32>
    %c0_4 = arith.constant 0 : index
    %c0_5 = arith.constant 0 : index
    %4 = vector.load %arg1[%c0_4, %c0_5] : memref<2x481xf32, #tpu.memory_space<vmem>>, vector<2x481xf32>
    %cst = arith.constant dense<0.000000e+00> : vector<2x10xf32>
    %5 = tpu.matmul %4, %0, %cst {dimension_numbers = #tpu.dot_dimension_numbers<[1], [0], [0], [1], [0, 0, 1, 1], [], []>} : vector<2x481xf32>, vector<481x10xf32>, vector<2x10xf32> -> vector<2x10xf32>
    %cst_6 = arith.constant 0.000000e+00 : f32
    %6 = vector.broadcast %cst_6 : f32 to vector<2x10xf32>
    %7 = arith.maximumf %5, %6 : vector<2x10xf32>
    %cst_7 = arith.constant dense<0.000000e+00> : vector<2x20xf32>
    %8 = tpu.matmul %7, %1, %cst_7 {dimension_numbers = #tpu.dot_dimension_numbers<[1], [0], [0], [1], [0, 0, 1, 1], [], []>} : vector<2x10xf32>, vector<10x20xf32>, vector<2x20xf32> -> vector<2x20xf32>
    %cst_8 = arith.constant 0.000000e+00 : f32
    %9 = vector.broadcast %cst_8 : f32 to vector<2x20xf32>
    %10 = arith.maximumf %8, %9 : vector<2x20xf32>
    %cst_9 = arith.constant dense<0.000000e+00> : vector<2x10xf32>
    %11 = tpu.matmul %10, %2, %cst_9 {dimension_numbers = #tpu.dot_dimension_numbers<[1], [0], [0], [1], [0, 0, 1, 1], [], []>} : vector<2x20xf32>, vector<20x10xf32>, vector<2x10xf32> -> vector<2x10xf32>
    %cst_10 = arith.constant dense<0xFF800000> : vector<2xf32>
    %12 = vector.multi_reduction <maximumf>, %11, %cst_10 [1] : vector<2x10xf32> to vector<2xf32>
    %13 = vector.shape_cast %12 : vector<2xf32> to vector<2x1xf32>
    %14 = vector.broadcast %13 : vector<2x1xf32> to vector<2x10xf32>
    %15 = arith.subf %11, %14 : vector<2x10xf32>
    %16 = math.exp %15 : vector<2x10xf32>
    %cst_11 = arith.constant dense<0.000000e+00> : vector<2xf32>
    %17 = vector.multi_reduction <add>, %16, %cst_11 [1] : vector<2x10xf32> to vector<2xf32>
    %18 = vector.shape_cast %17 : vector<2xf32> to vector<2x1xf32>
    %19 = vector.broadcast %18 : vector<2x1xf32> to vector<2x10xf32>
    %20 = arith.divf %16, %19 : vector<2x10xf32>
    %21 = vector.broadcast %3 : vector<1x10xf32> to vector<2x10xf32>
    %22 = arith.mulf %20, %21 : vector<2x10xf32>
    %cst_12 = arith.constant dense<0.000000e+00> : vector<2xf32>
    %23 = vector.multi_reduction <add>, %22, %cst_12 [1] : vector<2x10xf32> to vector<2xf32>
    %24 = vector.shape_cast %23 : vector<2xf32> to vector<2x1xf32>
    %c0_13 = arith.constant 0 : index
    %c0_14 = arith.constant 0 : index
    %25 = vector.load %arg3[%c0_13, %c0_14] : memref<2x1xf32, #tpu.memory_space<vmem>>, vector<2x1xf32>
    tpu.vector_store %arg3[%c0_13, %c0_14], %24 {strides = array<i32>} : memref<2x1xf32, #tpu.memory_space<vmem>>, vector<2x1xf32>,
    return
  }
  func.func @transform_0(%arg0: i32) -> (i32, i32) {
    %c0_i32 = arith.constant 0 : i32
    %c0_i32_0 = arith.constant 0 : i32
    return %arg0, %c0_i32 : i32, i32
  }
  func.func @transform_1(%arg0: i32) -> (i32, i32) {
    %c0_i32 = arith.constant 0 : i32
    %c0_i32_0 = arith.constant 0 : i32
    %c0_i32_1 = arith.constant 0 : i32
    return %c0_i32, %c0_i32_0 : i32, i32
  }
  func.func @transform_2(%arg0: i32) -> (i32, i32) {
    %c0_i32 = arith.constant 0 : i32
    %c0_i32_0 = arith.constant 0 : i32
    return %arg0, %c0_i32 : i32, i32
  }
}

</mosaic_0001>

<bundles_post_ra>
// kernel: stagewise_forward.1
= control target key start
LH: loop header
LB: loop body
LE: loop exit
PB: predicated region body
PF: predicated region fallthrough
CT: control target
= control target key end

     0   :  { %v587_v0 = vmov 0.0|0.0   ;;  %v588_v26 = vmov 1983009808   ;;  %v84_v28 = vlaneseq  ;;  %vm100_vm0 = vcmask 793600   ;;  %s838_s1 = inlined_call_operand.vmem [shape: f32[529,20], index: 1, kind: input, shape index: {}]   ;;  %s839_s0 = inlined_call_operand.vmem [shape: f32[2,481], index: 0, kind: input, shape index: {}]   ;;  %s840_s2 = inlined_call_operand.vmem [shape: f32[2,1], index: 2, kind: output, shape index: {}]  }
   0x1   :  { %528 = vmatprep.subr.bf16.mxu1 %v587_v0  ;;  %v43_v1 = vld [vmem:[%s838_s1 + $0x100] sm:$0xff]  ;;  %v44_v2 = vld [vmem:[%s838_s1 + $0x108] sm:$0xff]  ;;  %v45_v3 = vld [vmem:[%s838_s1 + $0x110] sm:$0xff]  ;;  %v82_v27 = vunpack.c.l.s4 %v588_v26  ;;  %vm103_vm1 = vcmask 1040384   ;;  %vm252_vm2 = vcmask 1041408   ;;  %vm590_vm3 = vmmov 1  }
   0x2   :  { %v529_v4 = vpack.c.bf16 %v44_v2, %v43_v1  ;;  %v46_v5 = vld [vmem:[%s838_s1 + $0x118] sm:$0xff]  ;;  %v47_v7 = vld [vmem:[%s838_s1 + $0x120] sm:$0xff]  ;;  %v48_v8 = vld [vmem:[%s838_s1 + $0x128] sm:$0xff]  ;;  %v85_v39 = vshrl.u32 %v84_v28, 7  ;;  %vm591_vm5 = vmmov 0   ;;  %vm248_vm6 = vcmask 80896  }
   0x3   :  { %v532_v6 = vpack.c.bf16 %v46_v5, %v45_v3  ;;  %v27_v9 = vld [vmem:[%s838_s1 + $0x80] sm:$0xff]  ;;  %v28_v10 = vld [vmem:[%s838_s1 + $0x88] sm:$0xff]  ;;  %v29_v15 = vld [vmem:[%s838_s1 + $0x90] sm:$0xff]  ;;  %v535_v18 = vpack.c.bf16 %v48_v8, %v47_v7  ;;  %v83_v38 = vunpack.c.0.s8 %v82_v27  ;;  %vm331_vm7 = vcmask 1043456  }
   0x4   :  { %530 = vmatpush1.bf16.msra.mxu1 %v529_v4  ;;  %v11_v11 = vld [vmem:[%s838_s1] sm:$0xff]  ;;  %v496_v12 = vpack.c.bf16 %v28_v10, %v27_v9  ;;  %v12_v13 = vld [vmem:[%s838_s1 + $0x8] sm:$0xff]  ;;  %v30_v16 = vld [vmem:[%s838_s1 + $0x98] sm:$0xff]  ;;  %vm327_vm8 = vcmask 162816   ;;  %vm405_vm9 = vcmask 74752   ;;  %vm425_vm10 = vcmask 1024  }
   0x5   :  { %531 = vmatprep.subr.bf16.mxu1 %v587_v0  ;;  %v498_v14 = vpack.c.bf16 %v12_v13, %v11_v11  ;;  %v13_v17 = vld [vmem:[%s838_s1 + $0x10] sm:$0xff]  ;;  %v500_v20 = vpack.c.bf16 %v30_v16, %v29_v15  ;;  %v14_v21 = vld [vmem:[%s838_s1 + $0x18] sm:$0xff]  ;;  %v31_v24 = vld [vmem:[%s838_s1 + $0xa0] sm:$0xff]  ;;  %v86_v49 = vsub.s32 %v83_v38, %v85_v39 }
   0x6   :  { %v49_v19 = vld [vmem:[%s838_s1 + $0x130] sm:$0xff]  ;;  %497 = vmatprep.subr.bf16.mxu0 %v496_v12  ;;  %v50_v22 = vld [vmem:[%s838_s1 + $0x138] sm:$0xff]  ;;  %v502_v23 = vpack.c.bf16 %v14_v21, %v13_v17  ;;  %v32_v25 = vld [vmem:[%s838_s1 + $0xa8] sm:$0xff] }
   0x7   :  { %499 = vmatpush3.bf16.msra.mxu0 %v498_v14  ;;  %v504_v29 = vpack.c.bf16 %v32_v25, %v31_v24  ;;  %v15_v30 = vld [vmem:[%s838_s1 + $0x20] sm:$0xff]  ;;  %v16_v31 = vld [vmem:[%s838_s1 + $0x28] sm:$0xff]  ;;  %v33_v32 = vld [vmem:[%s838_s1 + $0xb0] sm:$0xff]  ;;  %v538_v34 = vpack.c.bf16 %v50_v22, %v49_v19 }
   0x8   :  { %533 = vmatpush1.bf16.msra.mxu1 %v532_v6  ;;  %501 = vmatprep.subr.bf16.mxu0 %v500_v20  ;;  %v34_v33 = vld [vmem:[%s838_s1 + $0xb8] sm:$0xff]  ;;  %v51_v35 = vld [vmem:[%s838_s1 + $0x140] sm:$0xff]  ;;  %v52_v36 = vld [vmem:[%s838_s1 + $0x148] sm:$0xff]  ;;  %v506_v37 = vpack.c.bf16 %v16_v31, %v15_v30 }
   0x9   :  { %534 = vmatprep.subr.bf16.mxu1 %v587_v0  ;;  %v508_v40 = vpack.c.bf16 %v34_v33, %v33_v32  ;;  %v17_v41 = vld [vmem:[%s838_s1 + $0x30] sm:$0xff]  ;;  %v18_v42 = vld [vmem:[%s838_s1 + $0x38] sm:$0xff]  ;;  %v35_v43 = vld [vmem:[%s838_s1 + $0xc0] sm:$0xff]  ;;  %v541_v45 = vpack.c.bf16 %v52_v36, %v51_v35 }
   0xa   :  { %v36_v44 = vld [vmem:[%s838_s1 + $0xc8] sm:$0xff]  ;;  %v53_v46 = vld [vmem:[%s838_s1 + $0x150] sm:$0xff]  ;;  %v54_v47 = vld [vmem:[%s838_s1 + $0x158] sm:$0xff]  ;;  %v510_v48 = vpack.c.bf16 %v18_v42, %v17_v41 }
   0xb   :  { %503 = vmatpush3.bf16.msra.mxu0 %v502_v23  ;;  %v512_v50 = vpack.c.bf16 %v36_v44, %v35_v43  ;;  %v19_v51 = vld [vmem:[%s838_s1 + $0x40] sm:$0xff]  ;;  %v20_v52 = vld [vmem:[%s838_s1 + $0x48] sm:$0xff]  ;;  %v37_v53 = vld [vmem:[%s838_s1 + $0xd0] sm:$0xff]  ;;  %v544_v55 = vpack.c.bf16 %v54_v47, %v53_v46 }
   0xc   :  { %536 = vmatpush1.bf16.msra.mxu1 %v535_v18  ;;  %505 = vmatprep.subr.bf16.mxu0 %v504_v29  ;;  %v38_v54 = vld [vmem:[%s838_s1 + $0xd8] sm:$0xff]  ;;  %v78_v56 = vld [vmem:[%s839_s0] sm:$0xff]  ;;  %v56_v58 = vld [vmem:[%s838_s1 + $0x168] sm:$0xff]  ;;  %v514_v59 = vpack.c.bf16 %v20_v52, %v19_v51 }
   0xd   :  { %537 = vmatprep.subr.bf16.mxu1 %v587_v0  ;;  %v55_v57 = vld [vmem:[%s838_s1 + $0x160] sm:$0xff]  ;;  %v80_v60 = vcombine.high %v78_v56, %v78_v56  ;;  %v87_v61 = vrot.slane %v78_v56, %v86_v49  ;;  %v516_v62 = vpack.c.bf16 %v38_v54, %v37_v53  ;;  %v21_v63 = vld [vmem:[%s838_s1 + $0x50] sm:$0xff]  ;;  %v22_v1 = vld [vmem:[%s838_s1 + $0x58] sm:$0xff] }
   0xe   :  { %v39_v2 = vld [vmem:[%s838_s1 + $0xe0] sm:$0xff]  ;;  %v40_v3 = vld [vmem:[%s838_s1 + $0xe8] sm:$0xff]  ;;  %v547_v6 = vpack.c.bf16 %v56_v58, %v55_v57  ;;  %v57_v7 = vld [vmem:[%s838_s1 + $0x170] sm:$0xff]  ;;  %v518_v9 = vpack.c.bf16 %v22_v1, %v21_v63 }
   0xf   :  { %507 = vmatpush3.bf16.msra.mxu0 %v506_v37  ;;  %v95_v4 = vcombine.high %v87_v61, %v87_v61  ;;  %v736_v5 = vrot.slane %v80_v60, %v86_v49  ;;  %v58_v8 = vld [vmem:[%s838_s1 + $0x178] sm:$0xff]  ;;  %v520_v11 = vpack.c.bf16 %v40_v3, %v39_v2  ;;  %v23_v12 = vld [vmem:[%s838_s1 + $0x60] sm:$0xff]  ;;  %v24_v13 = vld [vmem:[%s838_s1 + $0x68] sm:$0xff] }
  0x10   :  { %539 = vmatpush1.bf16.msra.mxu1 %v538_v34  ;;  %509 = vmatprep.subr.bf16.mxu0 %v508_v40  ;;  %v41_v14 = vld [vmem:[%s838_s1 + $0xf0] sm:$0xff]  ;;  %v42_v15 = vld [vmem:[%s838_s1 + $0xf8] sm:$0xff]  ;;  %v550_v16 = vpack.c.bf16 %v58_v8, %v57_v7  ;;  %v59_v17 = vld [vmem:[%s838_s1 + $0x180] sm:$0xff]  ;;  %v522_v19 = vpack.c.bf16 %v24_v13, %v23_v12  ;;  %v589_v40 = vmov 0.0  }
  0x11   :  { %540 = vmatprep.subr.bf16.mxu1 %v587_v0  ;;  %v96_v10 = vcombine.high %v736_v5, %v736_v5  ;;  %171 = vmatprep.mubr.f32.mxu0 %v95_v4  ;;  %v60_v18 = vld [vmem:[%s838_s1 + $0x188] sm:$0xff]  ;;  %v524_v20 = vpack.c.bf16 %v42_v15, %v41_v14  ;;  %v25_v21 = vld [vmem:[%s838_s1 + $0x70] sm:$0xff]  ;;  %v26_v22 = vld [vmem:[%s838_s1 + $0x78] sm:$0xff] }
  0x12   :  { %v553_v23 = vpack.c.bf16 %v60_v18, %v59_v17  ;;  %v61_v24 = vld [vmem:[%s838_s1 + $0x190] sm:$0xff]  ;;  %v62_v25 = vld [vmem:[%s838_s1 + $0x198] sm:$0xff]  ;;  %v526_v26 = vpack.c.bf16 %v26_v22, %v25_v21  ;;  %v63_v28 = vld [vmem:[%s838_s1 + $0x1a0] sm:$0xff] }
  0x13   :  { %511 = vmatpush3.bf16.msra.mxu0 %v510_v48  ;;  %432 = vmatprep.mubr.msk.f32.mxu1 %vm100_vm0, %v96_v10  ;;  %v556_v27 = vpack.c.bf16 %v62_v25, %v61_v24  ;;  %v64_v29 = vld [vmem:[%s838_s1 + $0x1a8] sm:$0xff]  ;;  %v65_v31 = vld [vmem:[%s838_s1 + $0x1b0] sm:$0xff]  ;;  %v66_v32 = vld [vmem:[%s838_s1 + $0x1b8] sm:$0xff] }
  0x14   :  { %542 = vmatpush1.bf16.msra.mxu1 %v541_v45  ;;  %513 = vmatprep.subr.bf16.mxu0 %v512_v50  ;;  %v559_v30 = vpack.c.bf16 %v64_v29, %v63_v28  ;;  %v562_v33 = vpack.c.bf16 %v66_v32, %v65_v31  ;;  %v67_v34 = vld [vmem:[%s838_s1 + $0x1c0] sm:$0xff]  ;;  %v68_v35 = vld [vmem:[%s838_s1 + $0x1c8] sm:$0xff]  ;;  %v69_v37 = vld [vmem:[%s838_s1 + $0x1d0] sm:$0xff] }
  0x15   :  { %543 = vmatprep.subr.bf16.mxu1 %v587_v0  ;;  %v565_v36 = vpack.c.bf16 %v68_v35, %v67_v34  ;;  %v70_v38 = vld [vmem:[%s838_s1 + $0x1d8] sm:$0xff]  ;;  %v71_v41 = vld [vmem:[%s838_s1 + $0x1e0] sm:$0x1]  ;;  %v72_v42 = vld [vmem:[%s838_s1 + $0x1e8] sm:$0xff] }
  0x16   :  { %v568_v39 = vpack.c.bf16 %v70_v38, %v69_v37  ;;  %v73_v43 = vld [vmem:[%s838_s1 + $0x1f0] sm:$0x3]  ;;  %vm572_vm4 = vmpackc.low %vm252_vm2, %vm590_vm3  ;;  %v74_v48 = vld [vmem:[%s838_s1 + $0x1f8] sm:$0xff] }
  0x17   :  { %515 = vmatpush3.bf16.msra.mxu0 %v514_v59  ;;  %v571_v44 = vpack.c.bf16 %v73_v43, %v72_v42  ;;  %v75_v49 = vld [vmem:[%s838_s1 + $0x200] sm:$0xff] }
  0x18   :  { %545 = vmatpush1.bf16.msra.mxu1 %v544_v55  ;;  %517 = vmatprep.subr.bf16.mxu0 %v516_v62  ;;  %v575_v53 = vpack.c.bf16 %v75_v49, %v74_v48 }
  0x19   :  { %546 = vmatprep.subr.bf16.mxu1 %v587_v0 }
  0x1b   :  { %519 = vmatpush3.bf16.msra.mxu0 %v518_v9 }
  0x1c   :  { %548 = vmatpush1.bf16.msra.mxu1 %v547_v6  ;;  %521 = vmatprep.subr.bf16.mxu0 %v520_v11 }
  0x1d   :  { %549 = vmatprep.subr.bf16.mxu1 %v587_v0 }
  0x1f   :  { %523 = vmatpush3.bf16.msra.mxu0 %v522_v19 }
  0x20   :  { %551 = vmatpush1.bf16.msra.mxu1 %v550_v16  ;;  %525 = vmatprep.subr.bf16.mxu0 %v524_v20 }
  0x21   :  { %552 = vmatprep.subr.bf16.mxu1 %v587_v0 }
  0x23   :  { %527 = vmatpush3.bf16.msra.mxu0 %v526_v26 }
  0x24   :  { %554 = vmatpush1.bf16.msra.mxu1 %v553_v23  ;;  %570 = vmatprep.subr.bf16.mxu0 %v587_v0 }
  0x25   :  { %555 = vmatprep.subr.bf16.mxu1 %v587_v0 }
  0x26   :  { %172 = vmatmul.mubr.f32.vlgmr.msra.gmra.mrb[0].mxu0 %v87_v61 }
  0x27   :  { %573 = vmatpush3.bf16.msk.msra.mxu0 %vm572_vm4, %v571_v44  ;;  %484 = vmatprep.mubr.msk.f32.mxu0 %vm591_vm5, %v589_v40 }
  0x28   :  { %557 = vmatpush1.bf16.msra.mxu1 %v556_v27  ;;  %574 = vmatprep.subr.bf16.mxu0 %v587_v0 }
  0x29   :  { %558 = vmatprep.subr.bf16.mxu1 %v587_v0 }
  0x2c   :  { %560 = vmatpush1.bf16.msra.mxu1 %v559_v30 }
  0x2d   :  { %561 = vmatprep.subr.bf16.mxu1 %v587_v0 }
  0x30   :  { %563 = vmatpush1.bf16.msra.mxu1 %v562_v33 }
  0x31   :  { %564 = vmatprep.subr.bf16.mxu1 %v587_v0 }
  0x34   :  { %566 = vmatpush1.bf16.msra.mxu1 %v565_v36 }
  0x35   :  { %567 = vmatprep.subr.bf16.mxu1 %v587_v0  ;;  %v76_v0 = vld [vmem:[%s838_s1 + $0x208] sm:$0xf] }
  0x38   :  { %569 = vmatpush1.bf16.msra.mxu1 %v568_v39 }
  0x39   :  { %233 = vmatprep.subr.mxu1 %v589_v40 }
  0x3c   :  { %431 = vmatpush1.msk.msra.mxu1 %vm103_vm1, %v71_v41 }
  0x3d   :  { %242 = vmatmul.mubr.f32.vlgmr.msra.gmra.mrb[0].mxu1 %v736_v5  ;;  %v437_v5 = vld [vmem:[%s838_s1 + $0x210] ss:$0 sm:$0xff] }
  0xf9   :  { %v470_v45 = vpop.f32.mrb[0].mxu0 }
  0xfa   :  { %v471_v46 = vpop.f32.mrb[1].mxu0 }
  0xfb   :  { %v472_v47 = vadd.f32 %v471_v46, %v470_v45 }
 0x110   :  { %v243_v50 = vpop.f32.mrb[0].mxu1 }
 0x111   :  { %v244_v51 = vadd.f32 %v472_v47, %v243_v50  ;;  %v245_v52 = vpop.f32.mrb[1].mxu1 }
 0x113   :  { %v247_v54 = vmax.f32 %v244_v51, 0.0 }
 0x115   :  { %485 = vmatmul.mubr.msk.f32.vlgmr.msra.gmra.mrb[2].mxu0 %vm248_vm6, %v247_v54 }
 0x116   :  { %576 = vmatpush3.bf16.msra.mxu0 %v575_v53  ;;  %493 = vmatprep.mubr.msk.f32.mxu0 %vm591_vm5, %v589_v40 }
 0x117   :  { %491 = vmatprep.subr.mxu0 %v589_v40 }
 0x11a   :  { %492 = vmatpush3.msk.msra.mxu0 %vm331_vm7, %v76_v0 }
 0x1e8   :  { %v322_v55 = vpop.f32.mrb[2].mxu0 }
 0x1e9   :  { %v326_v56 = vmax.f32 %v322_v55, 0.0  ;;  %v486_v57 = vpop.f32.mrb[3].mxu0 }
 0x1eb   :  { %494 = vmatmul.mubr.msk.f32.vlgmr.msra.gmra.mrb[4].mxu0 %vm327_vm8, %v326_v56 }
 0x2be   :  { %v401_v58 = vpop.f32.mrb[4].mxu0 }
 0x2bf   :  { %v495_v59 = vpop.f32.mrb[5].mxu0  ;;  %v406_v60 = vsel %vm405_vm9, %v401_v58, -inf }
 0x2c0   :  { %407 = vmax.xlane.f32.xlu0 %v406_v60 }
 0x34d   :  { %v408_v61 = vpop.xlane.xlu0 %407 }
 0x34e   :  { %v409_v62 = vsub.f32 %v401_v58, %v408_v61 }
 0x350   :  { %v410_v63 = vmul.f32 1.442695, %v409_v62 }
 0x352   :  { %583 = vpow2.f32 %v410_v63 }
 0x35c   :  { %v584_v1 = vpop.eup %583 }
 0x35d   :  { %v412_v2 = vsel %vm405_vm9, %v584_v1, 0.0 }
 0x35e   :  { %413 = vadd.xlane.f32.xlu0 %v412_v2 }
 0x3eb   :  { %v414_v3 = vpop.xlane.xlu0 %413 }
 0x3ec   :  { %585 = vrcp.f32 %v414_v3 }
 0x3f6   :  { %v586_v4 = vpop.eup %585 }
 0x3f7   :  { %v416_v6 = vmul.f32 %v586_v4, %v584_v1 }
 0x3f9   :  { %v421_v7 = vmul.f32 %v437_v5, %v416_v6 }
 0x3fb   :  { %v422_v8 = vsel %vm405_vm9, %v421_v7, 0.0 }
 0x3fc   :  { %423 = vadd.xlane.f32.xlu1 %v422_v8 }
 0x489   :  { %v424_v9 = vpop.xlane.xlu1 %423 }
 0x48a   :  { %426 = vst.msk [vmem:[%s840_s2] sm:$0x3] %vm425_vm10, %v424_v9 }

</bundles_post_ra>
